<compile_context>
chip_gen: v5e
topology: v5e:2x2
jax: 0.10.0
libtpu: 0.0.40
codegen_flags: <defaults>
</compile_context>

<pallas_src>
import functools

import jax
import jax.numpy as jnp
from jax.experimental import pallas as pl
from jax.experimental.pallas import tpu as pltpu


def transformer_layer_kernel(num_heads, ff_chunk, kv_chunk,
                             x_ref,
                             wq_ref, bq_ref, wk_ref, bk_ref, wv_ref, bv_ref,
                             wo_ref, bo_ref,
                             w1_ref, b1_ref, w2_ref, b2_ref,
                             g1_ref, bt1_ref, g2_ref, bt2_ref,
                             o_ref):
    """One full TransformerEncoderLayer for a (block_b, S, D) activation block."""
    Bt, S, D = x_ref.shape
    M = Bt * S
    H = num_heads
    hd = D // H
    FF = w1_ref.shape[1]
    eps = 1e-5

    x = x_ref[...].astype(jnp.float32).reshape(M, D)              # (M, D) f32
    x_bf = x.astype(jnp.bfloat16)

    # ---------------- Q/K/V projections (bf16 MXU, f32 accumulate) ----------
    q = (jnp.dot(x_bf, wq_ref[...], preferred_element_type=jnp.float32)
         + bq_ref[...]) * (1.0 / float(hd) ** 0.5)
    k = jnp.dot(x_bf, wk_ref[...], preferred_element_type=jnp.float32) + bk_ref[...]
    v = jnp.dot(x_bf, wv_ref[...], preferred_element_type=jnp.float32) + bv_ref[...]

    # ---------------- batched multi-head attention --------------------------
    # Heads fold into the einsum batch dim (H*Bt).  The rearrangement uses only
    # lane slices + a leading-axis stack + outer reshapes (no 4-D transposes,
    # no per-head VMEM scratch / masked stores).
    def split_heads(t):                                           # (M,D)->(H*Bt,S,hd)
        th = jnp.stack([t[:, h * hd:(h + 1) * hd] for h in range(H)], axis=0)
        return th.reshape(H * Bt, S, hd).astype(jnp.bfloat16)

    qh, kh, vh = split_heads(q), split_heads(k), split_heads(v)

    def scores(lo, sz):                                           # (H*Bt, S, sz) f32
        return jnp.einsum('bqd,bkd->bqk', qh, kh[:, lo:lo + sz],
                          preferred_element_type=jnp.float32)

    def pv(p, lo, sz):                                            # (H*Bt, S, hd) f32
        return jnp.einsum('bqk,bkd->bqd', p.astype(jnp.bfloat16),
                          vh[:, lo:lo + sz], preferred_element_type=jnp.float32)

    # Flash-style online softmax over key chunks (single pass when S<=kv_chunk).
    kc = min(kv_chunk, S)
    s0 = scores(0, kc)
    m = jnp.max(s0, axis=-1, keepdims=True)
    p0 = jnp.exp(s0 - m)
    l = jnp.sum(p0, axis=-1, keepdims=True)
    acc = pv(p0, 0, kc)
    for c in range(kc, S, kc):
        cs = min(kc, S - c)
        s = scores(c, cs)
        m_new = jnp.maximum(m, jnp.max(s, axis=-1, keepdims=True))
        a = jnp.exp(m - m_new)
        p = jnp.exp(s - m_new)
        l = a * l + jnp.sum(p, axis=-1, keepdims=True)
        acc = a * acc + pv(p, c, cs)
        m = m_new
    # NOTE: EUP approximate reciprocal => softmax rows sum to 1 only to ~1e-3.
    acc = acc * pl.reciprocal(l, approx=True)                     # (H*Bt, S, hd)

    acc = acc.reshape(H, M, hd)
    attn_in = jnp.concatenate([acc[h] for h in range(H)], axis=-1)    # (M, D)
    attn = jnp.dot(attn_in.astype(jnp.bfloat16), wo_ref[...],
                   preferred_element_type=jnp.float32) + bo_ref[...]

    def layer_norm(y, g, b):
        mu = jnp.mean(y, axis=-1, keepdims=True)
        var = jnp.mean((y - mu) * (y - mu), axis=-1, keepdims=True)
        return (y - mu) * jax.lax.rsqrt(var + eps) * g + b

    # residual + LayerNorm1 (post-norm), f32
    x1 = layer_norm(x + attn, g1_ref[...], bt1_ref[...])

    # ---------------- feed-forward, chunked over FF columns -----------------
    x1_bf = x1.astype(jnp.bfloat16)
    b1 = b1_ref[...]
    ff = jnp.broadcast_to(b2_ref[...], (M, D)).astype(jnp.float32)   # acc starts at b2
    for c in range(0, FF, ff_chunk):
        cs = min(ff_chunk, FF - c)
        h1 = jnp.dot(x1_bf, w1_ref[:, c:c + cs],
                     preferred_element_type=jnp.float32) + b1[:, c:c + cs]
        h1 = jnp.maximum(h1, 0.0)                                  # ReLU
        ff = ff + jnp.dot(h1.astype(jnp.bfloat16), w2_ref[c:c + cs, :],
                          preferred_element_type=jnp.float32)

    # residual + LayerNorm2
    x2 = layer_norm(x1 + ff, g2_ref[...], bt2_ref[...])
    o_ref[...] = x2.reshape(Bt, S, D).astype(o_ref.dtype)


def _vmem_capacity_bytes():
    """Physical per-core VMEM; fall back to the smallest current part (v7x)."""
    try:
        return int(pltpu.get_tpu_info().vmem_capacity_bytes)
    except Exception:
        return 64 << 20


def _vmem_estimate(block_b, S, D, FF, H, ff_chunk, kv_chunk, in_sz, out_sz):
    """Rough per-grid-step VMEM footprint in bytes."""
    M = block_b * S
    kc = min(kv_chunk, S)
    fc = min(ff_chunk, FF)
    weights = 2 * (4 * D * D + 2 * D * FF)             # bf16 weights, single-buffered
    params = 4 * (8 * D + FF)                          # f32 biases + LN params
    io = 2 * M * D * (in_sz + out_sz)                  # double-buffered act blocks
    act = 7 * M * D * 4                                # x, q, k, v, attn, x1, ff (f32)
    attn = 3 * block_b * H * S * kc * 4                # scores + probs (+ slack)
    ffn = 3 * M * fc * 4                               # h1 f32 + bf16 copy (+ slack)
    return weights + params + io + act + max(attn, ffn) + (4 << 20)


def transformer_layer(x, p, *, num_heads, out_dtype=None, ff_chunk=None, kv_chunk=None):
    B, S, D = x.shape
    assert D % num_heads == 0
    H = num_heads
    FF = p['w1_t'].shape[1]
    out_dtype = x.dtype if out_dtype is None else out_dtype

    cap = _vmem_capacity_bytes()
    budget = min(cap - (8 << 20), int(0.9 * cap))      # never above physical VMEM
    big_vmem = cap >= (96 << 20)                       # v5e/v6e (128 MiB) vs v7x (64 MiB)
    target_rows = 2048 if big_vmem else 1024
    ff_chunk = (FF if big_vmem else min(FF, 1024)) if ff_chunk is None else ff_chunk
    ff_chunk = max(1, min(ff_chunk, FF))
    kv_chunk = (1024 if big_vmem else 512) if kv_chunk is None else kv_chunk
    kv_chunk = max(1, min(kv_chunk, S))

    in_sz = jnp.dtype(x.dtype).itemsize
    out_sz = jnp.dtype(out_dtype).itemsize

    def fits(bb):
        return _vmem_estimate(bb, S, D, FF, H, ff_chunk, kv_chunk, in_sz, out_sz) <= budget

    divisors = [d for d in range(1, B + 1) if B % d == 0]
    fit = [d for d in divisors if d * S <= target_rows and fits(d)] or [1]
    if not big_vmem:                                   # v7x: even grid keeps both TCs busy
        even = [d for d in fit if (B // d) % 2 == 0]
        if even:
            fit = even
    block_b = max(fit)
    grid_b = B // block_b

    est = _vmem_estimate(block_b, S, D, FF, H, ff_chunk, kv_chunk, in_sz, out_sz)
    vmem_limit = int(min(budget, max(48 << 20, est)))

    def resident(shape):
        """Whole-array weight/bias block: constant index_map -> single buffer."""
        n = len(shape)
        idx = lambda b: (0,) * n
        try:
            return pl.BlockSpec(shape, idx, pipeline_mode=pl.Buffered(1))
        except Exception:      # pipeline_mode unavailable -> default double-buffering
            return pl.BlockSpec(shape, idx)

    kernel = functools.partial(transformer_layer_kernel, num_heads, ff_chunk, kv_chunk)
    return pl.pallas_call(
        kernel,
        out_shape=jax.ShapeDtypeStruct((B, S, D), out_dtype),
        grid_spec=pltpu.PrefetchScalarGridSpec(
            num_scalar_prefetch=0,
            grid=(grid_b,),
            in_specs=[
                pl.BlockSpec((block_b, S, D), lambda b: (b, 0, 0)),   # x
                resident((D, D)), resident((1, D)),        # Wq^T, bq
                resident((D, D)), resident((1, D)),        # Wk^T, bk
                resident((D, D)), resident((1, D)),        # Wv^T, bv
                resident((D, D)), resident((1, D)),        # Wo^T, bo
                resident((D, FF)), resident((1, FF)),      # W1^T, b1
                resident((FF, D)), resident((1, D)),       # W2^T, b2
                resident((1, D)), resident((1, D)),        # ln1 gamma, beta
                resident((1, D)), resident((1, D)),        # ln2 gamma, beta
            ],
            out_specs=pl.BlockSpec((block_b, S, D), lambda b: (b, 0, 0)),
        ),
        compiler_params=pltpu.CompilerParams(
            dimension_semantics=("parallel",),
            vmem_limit_bytes=vmem_limit),
    )(x, p['wq_t'], p['bq'], p['wk_t'], p['bk'], p['wv_t'], p['bv'],
      p['wo_t'], p['bo'], p['w1_t'], p['b1'], p['w2_t'], p['b2'],
      p['g1'], p['bt1'], p['g2'], p['bt2'])


def transform_encoder(x, layer_params, *, num_heads):
    """Equivalent of TransformEncoder.forward: stack of encoder layers.

    Inter-layer activations travel in bf16 (halves HBM traffic); the final
    layer emits f32 to match the PyTorch output dtype.
    TODO(synk): cross-pallas_call prefetch of layer l+1's weights (P10).
    """
    out = x
    last = len(layer_params) - 1
    for i, p in enumerate(layer_params):
        dt = jnp.float32 if i == last else jnp.bfloat16
        out = transformer_layer(out, p, num_heads=num_heads, out_dtype=dt)
    return out


def init_layer_params(key, D, FF):
    """Deterministic synthetic parameters (shapes match nn.TransformerEncoderLayer).

    Weights are stored pre-transposed and in bf16 (MXU fast path); biases and
    LayerNorm parameters stay f32.
    """
    ks = jax.random.split(key, 4)
    s = 0.02
    wqkv = jax.random.normal(ks[0], (3 * D, D), jnp.float32) * s   # in_proj_weight
    wo = jax.random.normal(ks[1], (D, D), jnp.float32) * s         # out_proj.weight
    w1 = jax.random.normal(ks[2], (FF, D), jnp.float32) * s        # linear1.weight
    w2 = jax.random.normal(ks[3], (D, FF), jnp.float32) * s        # linear2.weight
    wq, wk, wv = wqkv[:D], wqkv[D:2 * D], wqkv[2 * D:]
    bf = jnp.bfloat16
    return dict(
        wq_t=jnp.asarray(wq.T, bf), bq=jnp.zeros((1, D), jnp.float32),
        wk_t=jnp.asarray(wk.T, bf), bk=jnp.zeros((1, D), jnp.float32),
        wv_t=jnp.asarray(wv.T, bf), bv=jnp.zeros((1, D), jnp.float32),
        wo_t=jnp.asarray(wo.T, bf), bo=jnp.zeros((1, D), jnp.float32),
        w1_t=jnp.asarray(w1.T, bf), b1=jnp.zeros((1, FF), jnp.float32),
        w2_t=jnp.asarray(w2.T, bf), b2=jnp.zeros((1, D), jnp.float32),
        g1=jnp.ones((1, D), jnp.float32), bt1=jnp.zeros((1, D), jnp.float32),
        g2=jnp.ones((1, D), jnp.float32), bt2=jnp.zeros((1, D), jnp.float32),
    )


if __name__ == "__main__":
    # Small shapes consistent with the module (embed_dim / num_heads / num_layers scaled down).
    B, S, D, H, FF, L = 2, 8, 32, 4, 64, 2

    key = jax.random.PRNGKey(0)
    kx, kp = jax.random.split(key)
    x = jax.random.normal(kx, (B, S, D), jnp.float32)
    layer_params = [init_layer_params(k, D, FF) for k in jax.random.split(kp, L)]

    out = transform_encoder(x, layer_params, num_heads=H)
    out = jax.block_until_ready(out)
    assert out.shape == (B, S, D)
    assert out.dtype == jnp.float32
    assert bool(jnp.all(jnp.isfinite(out)))
    print("KERNEL_OK")
</pallas_src>

<mosaic_0001>
module attributes {stable_mosaic.version = 11 : i64} {
  func.func @transformer_layer_kernel(%arg0: i32, %arg1: memref<1x8x32xf32, #tpu.memory_space<vmem>>, %arg2: memref<32x32xbf16, #tpu.memory_space<vmem>>, %arg3: memref<1x32xf32, #tpu.memory_space<vmem>>, %arg4: memref<32x32xbf16, #tpu.memory_space<vmem>>, %arg5: memref<1x32xf32, #tpu.memory_space<vmem>>, %arg6: memref<32x32xbf16, #tpu.memory_space<vmem>>, %arg7: memref<1x32xf32, #tpu.memory_space<vmem>>, %arg8: memref<32x32xbf16, #tpu.memory_space<vmem>>, %arg9: memref<1x32xf32, #tpu.memory_space<vmem>>, %arg10: memref<32x64xbf16, #tpu.memory_space<vmem>>, %arg11: memref<1x64xf32, #tpu.memory_space<vmem>>, %arg12: memref<64x32xbf16, #tpu.memory_space<vmem>>, %arg13: memref<1x32xf32, #tpu.memory_space<vmem>>, %arg14: memref<1x32xf32, #tpu.memory_space<vmem>>, %arg15: memref<1x32xf32, #tpu.memory_space<vmem>>, %arg16: memref<1x32xf32, #tpu.memory_space<vmem>>, %arg17: memref<1x32xf32, #tpu.memory_space<vmem>>, %arg18: memref<1x8x32xbf16, #tpu.memory_space<vmem>>) attributes {dimension_semantics = [#tpu.dimension_semantics<parallel>], iteration_bounds = array<i64: 2>, scalar_prefetch = 0 : i64, scratch_operands = 0 : i64, tpu.core_type = #tpu.core_type<tc>, window_params = [{transform_indices = @transform_0, window_bounds = array<i64: 1, 8, 32>}, {pipeline_mode = #tpu.pipeline_mode<synchronous>, transform_indices = @transform_1, window_bounds = array<i64: 32, 32>}, {pipeline_mode = #tpu.pipeline_mode<synchronous>, transform_indices = @transform_2, window_bounds = array<i64: 1, 32>}, {pipeline_mode = #tpu.pipeline_mode<synchronous>, transform_indices = @transform_3, window_bounds = array<i64: 32, 32>}, {pipeline_mode = #tpu.pipeline_mode<synchronous>, transform_indices = @transform_4, window_bounds = array<i64: 1, 32>}, {pipeline_mode = #tpu.pipeline_mode<synchronous>, transform_indices = @transform_5, window_bounds = array<i64: 32, 32>}, {pipeline_mode = #tpu.pipeline_mode<synchronous>, transform_indices = @transform_6, window_bounds = array<i64: 1, 32>}, {pipeline_mode = #tpu.pipeline_mode<synchronous>, transform_indices = @transform_7, window_bounds = array<i64: 32, 32>}, {pipeline_mode = #tpu.pipeline_mode<synchronous>, transform_indices = @transform_8, window_bounds = array<i64: 1, 32>}, {pipeline_mode = #tpu.pipeline_mode<synchronous>, transform_indices = @transform_9, window_bounds = array<i64: 32, 64>}, {pipeline_mode = #tpu.pipeline_mode<synchronous>, transform_indices = @transform_10, window_bounds = array<i64: 1, 64>}, {pipeline_mode = #tpu.pipeline_mode<synchronous>, transform_indices = @transform_11, window_bounds = array<i64: 64, 32>}, {pipeline_mode = #tpu.pipeline_mode<synchronous>, transform_indices = @transform_12, window_bounds = array<i64: 1, 32>}, {pipeline_mode = #tpu.pipeline_mode<synchronous>, transform_indices = @transform_13, window_bounds = array<i64: 1, 32>}, {pipeline_mode = #tpu.pipeline_mode<synchronous>, transform_indices = @transform_14, window_bounds = array<i64: 1, 32>}, {pipeline_mode = #tpu.pipeline_mode<synchronous>, transform_indices = @transform_15, window_bounds = array<i64: 1, 32>}, {pipeline_mode = #tpu.pipeline_mode<synchronous>, transform_indices = @transform_16, window_bounds = array<i64: 1, 32>}, {transform_indices = @transform_17, window_bounds = array<i64: 1, 8, 32>}]} {
    %c0 = arith.constant 0 : index
    %c0_0 = arith.constant 0 : index
    %c0_1 = arith.constant 0 : index
    %0 = vector.load %arg1[%c0, %c0_0, %c0_1] : memref<1x8x32xf32, #tpu.memory_space<vmem>>, vector<1x8x32xf32>
    %1 = vector.shape_cast %0 : vector<1x8x32xf32> to vector<8x32xf32>
    %2 = arith.truncf %1 : vector<8x32xf32> to vector<8x32xbf16>
    %c0_2 = arith.constant 0 : index
    %c0_3 = arith.constant 0 : index
    %3 = vector.load %arg2[%c0_2, %c0_3] : memref<32x32xbf16, #tpu.memory_space<vmem>>, vector<32x32xbf16>
    %cst = arith.constant dense<0.000000e+00> : vector<8x32xf32>
    %4 = tpu.matmul %2, %3, %cst {dimension_numbers = #tpu.dot_dimension_numbers<[1], [0], [0], [1], [0, 0, 1, 1], [], []>} : vector<8x32xbf16>, vector<32x32xbf16>, vector<8x32xf32> -> vector<8x32xf32>
    %c0_4 = arith.constant 0 : index
    %c0_5 = arith.constant 0 : index
    %5 = vector.load %arg3[%c0_4, %c0_5] : memref<1x32xf32, #tpu.memory_space<vmem>>, vector<1x32xf32>
    %6 = vector.broadcast %5 : vector<1x32xf32> to vector<8x32xf32>
    %7 = arith.addf %4, %6 : vector<8x32xf32>
    %cst_6 = arith.constant 0.353553385 : f32
    %8 = vector.broadcast %cst_6 : f32 to vector<8x32xf32>
    %9 = arith.mulf %7, %8 : vector<8x32xf32>
    %c0_7 = arith.constant 0 : index
    %c0_8 = arith.constant 0 : index
    %10 = vector.load %arg4[%c0_7, %c0_8] : memref<32x32xbf16, #tpu.memory_space<vmem>>, vector<32x32xbf16>
    %cst_9 = arith.constant dense<0.000000e+00> : vector<8x32xf32>
    %11 = tpu.matmul %2, %10, %cst_9 {dimension_numbers = #tpu.dot_dimension_numbers<[1], [0], [0], [1], [0, 0, 1, 1], [], []>} : vector<8x32xbf16>, vector<32x32xbf16>, vector<8x32xf32> -> vector<8x32xf32>
    %c0_10 = arith.constant 0 : index
    %c0_11 = arith.constant 0 : index
    %12 = vector.load %arg5[%c0_10, %c0_11] : memref<1x32xf32, #tpu.memory_space<vmem>>, vector<1x32xf32>
    %13 = vector.broadcast %12 : vector<1x32xf32> to vector<8x32xf32>
    %14 = arith.addf %11, %13 : vector<8x32xf32>
    %c0_12 = arith.constant 0 : index
    %c0_13 = arith.constant 0 : index
    %15 = vector.load %arg6[%c0_12, %c0_13] : memref<32x32xbf16, #tpu.memory_space<vmem>>, vector<32x32xbf16>
    %cst_14 = arith.constant dense<0.000000e+00> : vector<8x32xf32>
    %16 = tpu.matmul %2, %15, %cst_14 {dimension_numbers = #tpu.dot_dimension_numbers<[1], [0], [0], [1], [0, 0, 1, 1], [], []>} : vector<8x32xbf16>, vector<32x32xbf16>, vector<8x32xf32> -> vector<8x32xf32>
    %c0_15 = arith.constant 0 : index
    %c0_16 = arith.constant 0 : index
    %17 = vector.load %arg7[%c0_15, %c0_16] : memref<1x32xf32, #tpu.memory_space<vmem>>, vector<1x32xf32>
    %18 = vector.broadcast %17 : vector<1x32xf32> to vector<8x32xf32>
    %19 = arith.addf %16, %18 : vector<8x32xf32>
    %20 = vector.extract_strided_slice %9 {offsets = [0, 0], sizes = [8, 8], strides = [1, 1]} : vector<8x32xf32> to vector<8x8xf32>
    %21 = vector.extract_strided_slice %9 {offsets = [0, 8], sizes = [8, 8], strides = [1, 1]} : vector<8x32xf32> to vector<8x8xf32>
    %22 = vector.extract_strided_slice %9 {offsets = [0, 16], sizes = [8, 8], strides = [1, 1]} : vector<8x32xf32> to vector<8x8xf32>
    %23 = vector.extract_strided_slice %9 {offsets = [0, 24], sizes = [8, 8], strides = [1, 1]} : vector<8x32xf32> to vector<8x8xf32>
    %24 = vector.shape_cast %20 : vector<8x8xf32> to vector<1x8x8xf32>
    %25 = vector.shape_cast %21 : vector<8x8xf32> to vector<1x8x8xf32>
    %26 = vector.shape_cast %22 : vector<8x8xf32> to vector<1x8x8xf32>
    %27 = vector.shape_cast %23 : vector<8x8xf32> to vector<1x8x8xf32>
    %28 = tpu.concatenate %24, %25, %26, %27 in 0 : vector<1x8x8xf32>, vector<1x8x8xf32>, vector<1x8x8xf32>, vector<1x8x8xf32> -> vector<4x8x8xf32>
    %29 = arith.truncf %28 : vector<4x8x8xf32> to vector<4x8x8xbf16>
    %30 = vector.extract_strided_slice %14 {offsets = [0, 0], sizes = [8, 8], strides = [1, 1]} : vector<8x32xf32> to vector<8x8xf32>
    %31 = vector.extract_strided_slice %14 {offsets = [0, 8], sizes = [8, 8], strides = [1, 1]} : vector<8x32xf32> to vector<8x8xf32>
    %32 = vector.extract_strided_slice %14 {offsets = [0, 16], sizes = [8, 8], strides = [1, 1]} : vector<8x32xf32> to vector<8x8xf32>
    %33 = vector.extract_strided_slice %14 {offsets = [0, 24], sizes = [8, 8], strides = [1, 1]} : vector<8x32xf32> to vector<8x8xf32>
    %34 = vector.shape_cast %30 : vector<8x8xf32> to vector<1x8x8xf32>
    %35 = vector.shape_cast %31 : vector<8x8xf32> to vector<1x8x8xf32>
    %36 = vector.shape_cast %32 : vector<8x8xf32> to vector<1x8x8xf32>
    %37 = vector.shape_cast %33 : vector<8x8xf32> to vector<1x8x8xf32>
    %38 = tpu.concatenate %34, %35, %36, %37 in 0 : vector<1x8x8xf32>, vector<1x8x8xf32>, vector<1x8x8xf32>, vector<1x8x8xf32> -> vector<4x8x8xf32>
    %39 = arith.truncf %38 : vector<4x8x8xf32> to vector<4x8x8xbf16>
    %40 = vector.extract_strided_slice %19 {offsets = [0, 0], sizes = [8, 8], strides = [1, 1]} : vector<8x32xf32> to vector<8x8xf32>
    %41 = vector.extract_strided_slice %19 {offsets = [0, 8], sizes = [8, 8], strides = [1, 1]} : vector<8x32xf32> to vector<8x8xf32>
    %42 = vector.extract_strided_slice %19 {offsets = [0, 16], sizes = [8, 8], strides = [1, 1]} : vector<8x32xf32> to vector<8x8xf32>
    %43 = vector.extract_strided_slice %19 {offsets = [0, 24], sizes = [8, 8], strides = [1, 1]} : vector<8x32xf32> to vector<8x8xf32>
    %44 = vector.shape_cast %40 : vector<8x8xf32> to vector<1x8x8xf32>
    %45 = vector.shape_cast %41 : vector<8x8xf32> to vector<1x8x8xf32>
    %46 = vector.shape_cast %42 : vector<8x8xf32> to vector<1x8x8xf32>
    %47 = vector.shape_cast %43 : vector<8x8xf32> to vector<1x8x8xf32>
    %48 = tpu.concatenate %44, %45, %46, %47 in 0 : vector<1x8x8xf32>, vector<1x8x8xf32>, vector<1x8x8xf32>, vector<1x8x8xf32> -> vector<4x8x8xf32>
    %49 = arith.truncf %48 : vector<4x8x8xf32> to vector<4x8x8xbf16>
    "tpu.trace_start"() <{level = 10 : i32, message = "bqd,bkd->bqk"}> : () -> ()
    %cst_17 = arith.constant dense<0.000000e+00> : vector<4x8x8xf32>
    %50 = tpu.matmul %29, %39, %cst_17 {dimension_numbers = #tpu.dot_dimension_numbers<[2], [2], [1], [1], [0, 0, 0, 1, 1, 1], [0], [0]>} : vector<4x8x8xbf16>, vector<4x8x8xbf16>, vector<4x8x8xf32> -> vector<4x8x8xf32>
    "tpu.trace_stop"() : () -> ()
    %cst_18 = arith.constant dense<0xFF800000> : vector<4x8xf32>
    %51 = vector.multi_reduction <maximumf>, %50, %cst_18 [2] : vector<4x8x8xf32> to vector<4x8xf32>
    %52 = vector.shape_cast %51 : vector<4x8xf32> to vector<4x8x1xf32>
    %53 = vector.broadcast %52 : vector<4x8x1xf32> to vector<4x8x8xf32>
    %54 = arith.subf %50, %53 : vector<4x8x8xf32>
    %55 = math.exp %54 : vector<4x8x8xf32>
    %cst_19 = arith.constant dense<0.000000e+00> : vector<4x8xf32>
    %56 = vector.multi_reduction <add>, %55, %cst_19 [2] : vector<4x8x8xf32> to vector<4x8xf32>
    %57 = vector.shape_cast %56 : vector<4x8xf32> to vector<4x8x1xf32>
    %58 = arith.truncf %55 : vector<4x8x8xf32> to vector<4x8x8xbf16>
    "tpu.trace_start"() <{level = 10 : i32, message = "bqk,bkd->bqd"}> : () -> ()
    %cst_20 = arith.constant dense<0.000000e+00> : vector<4x8x8xf32>
    %59 = tpu.matmul %58, %49, %cst_20 {dimension_numbers = #tpu.dot_dimension_numbers<[2], [1], [1], [2], [0, 0, 0, 1, 1, 2], [0], [0]>} : vector<4x8x8xbf16>, vector<4x8x8xbf16>, vector<4x8x8xf32> -> vector<4x8x8xf32>
    "tpu.trace_stop"() : () -> ()
    %60 = tpu.reciprocal %57 {approx = true} : vector<4x8x1xf32> -> vector<4x8x1xf32>
    %61 = vector.broadcast %60 : vector<4x8x1xf32> to vector<4x8x8xf32>
    %62 = arith.mulf %59, %61 : vector<4x8x8xf32>
    %63 = vector.extract_strided_slice %62 {offsets = [0, 0, 0], sizes = [1, 8, 8], strides = [1, 1, 1]} : vector<4x8x8xf32> to vector<1x8x8xf32>
    %64 = vector.shape_cast %63 : vector<1x8x8xf32> to vector<8x8xf32>
    %65 = vector.extract_strided_slice %62 {offsets = [1, 0, 0], sizes = [1, 8, 8], strides = [1, 1, 1]} : vector<4x8x8xf32> to vector<1x8x8xf32>
    %66 = vector.shape_cast %65 : vector<1x8x8xf32> to vector<8x8xf32>
    %67 = vector.extract_strided_slice %62 {offsets = [2, 0, 0], sizes = [1, 8, 8], strides = [1, 1, 1]} : vector<4x8x8xf32> to vector<1x8x8xf32>
    %68 = vector.shape_cast %67 : vector<1x8x8xf32> to vector<8x8xf32>
    %69 = vector.extract_strided_slice %62 {offsets = [3, 0, 0], sizes = [1, 8, 8], strides = [1, 1, 1]} : vector<4x8x8xf32> to vector<1x8x8xf32>
    %70 = vector.shape_cast %69 : vector<1x8x8xf32> to vector<8x8xf32>
    %71 = tpu.concatenate %64, %66, %68, %70 in 1 : vector<8x8xf32>, vector<8x8xf32>, vector<8x8xf32>, vector<8x8xf32> -> vector<8x32xf32>
    %72 = arith.truncf %71 : vector<8x32xf32> to vector<8x32xbf16>
    %c0_21 = arith.constant 0 : index
    %c0_22 = arith.constant 0 : index
    %73 = vector.load %arg8[%c0_21, %c0_22] : memref<32x32xbf16, #tpu.memory_space<vmem>>, vector<32x32xbf16>
    %cst_23 = arith.constant dense<0.000000e+00> : vector<8x32xf32>
    %74 = tpu.matmul %72, %73, %cst_23 {dimension_numbers = #tpu.dot_dimension_numbers<[1], [0], [0], [1], [0, 0, 1, 1], [], []>} : vector<8x32xbf16>, vector<32x32xbf16>, vector<8x32xf32> -> vector<8x32xf32>
    %c0_24 = arith.constant 0 : index
    %c0_25 = arith.constant 0 : index
    %75 = vector.load %arg9[%c0_24, %c0_25] : memref<1x32xf32, #tpu.memory_space<vmem>>, vector<1x32xf32>
    %76 = vector.broadcast %75 : vector<1x32xf32> to vector<8x32xf32>
    %77 = arith.addf %74, %76 : vector<8x32xf32>
    %78 = arith.addf %1, %77 : vector<8x32xf32>
    %c0_26 = arith.constant 0 : index
    %c0_27 = arith.constant 0 : index
    %79 = vector.load %arg14[%c0_26, %c0_27] : memref<1x32xf32, #tpu.memory_space<vmem>>, vector<1x32xf32>
    %c0_28 = arith.constant 0 : index
    %c0_29 = arith.constant 0 : index
    %80 = vector.load %arg15[%c0_28, %c0_29] : memref<1x32xf32, #tpu.memory_space<vmem>>, vector<1x32xf32>
    %cst_30 = arith.constant dense<0.000000e+00> : vector<8xf32>
    %81 = vector.multi_reduction <add>, %78, %cst_30 [1] : vector<8x32xf32> to vector<8xf32>
    %82 = vector.shape_cast %81 : vector<8xf32> to vector<8x1xf32>
    %cst_31 = arith.constant 3.200000e+01 : f32
    %83 = vector.broadcast %cst_31 : f32 to vector<8x1xf32>
    %84 = arith.divf %82, %83 : vector<8x1xf32>
    %85 = vector.broadcast %84 : vector<8x1xf32> to vector<8x32xf32>
    %86 = arith.subf %78, %85 : vector<8x32xf32>
    %87 = vector.broadcast %84 : vector<8x1xf32> to vector<8x32xf32>
    %88 = arith.subf %78, %87 : vector<8x32xf32>
    %89 = arith.mulf %86, %88 : vector<8x32xf32>
    %cst_32 = arith.constant dense<0.000000e+00> : vector<8xf32>
    %90 = vector.multi_reduction <add>, %89, %cst_32 [1] : vector<8x32xf32> to vector<8xf32>
    %91 = vector.shape_cast %90 : vector<8xf32> to vector<8x1xf32>
    %cst_33 = arith.constant 3.200000e+01 : f32
    %92 = vector.broadcast %cst_33 : f32 to vector<8x1xf32>
    %93 = arith.divf %91, %92 : vector<8x1xf32>
    %94 = vector.broadcast %84 : vector<8x1xf32> to vector<8x32xf32>
    %95 = arith.subf %78, %94 : vector<8x32xf32>
    %cst_34 = arith.constant 9.99999974E-6 : f32
    %96 = vector.broadcast %cst_34 : f32 to vector<8x1xf32>
    %97 = arith.addf %93, %96 : vector<8x1xf32>
    %98 = math.rsqrt %97 : vector<8x1xf32>
    %99 = vector.broadcast %98 : vector<8x1xf32> to vector<8x32xf32>
    %100 = arith.mulf %95, %99 : vector<8x32xf32>
    %101 = vector.broadcast %79 : vector<1x32xf32> to vector<8x32xf32>
    %102 = arith.mulf %100, %101 : vector<8x32xf32>
    %103 = vector.broadcast %80 : vector<1x32xf32> to vector<8x32xf32>
    %104 = arith.addf %102, %103 : vector<8x32xf32>
    %105 = arith.truncf %104 : vector<8x32xf32> to vector<8x32xbf16>
    %c0_35 = arith.constant 0 : index
    %c0_36 = arith.constant 0 : index
    %106 = vector.load %arg11[%c0_35, %c0_36] : memref<1x64xf32, #tpu.memory_space<vmem>>, vector<1x64xf32>
    %c0_37 = arith.constant 0 : index
    %c0_38 = arith.constant 0 : index
    %107 = vector.load %arg13[%c0_37, %c0_38] : memref<1x32xf32, #tpu.memory_space<vmem>>, vector<1x32xf32>
    %108 = vector.shape_cast %107 : vector<1x32xf32> to vector<1x32xf32>
    %109 = vector.broadcast %108 : vector<1x32xf32> to vector<8x32xf32>
    %c0_39 = arith.constant 0 : index
    %c0_40 = arith.constant 0 : index
    %110 = vector.load %arg10[%c0_39, %c0_40] : memref<32x64xbf16, #tpu.memory_space<vmem>>, vector<32x64xbf16>
    %cst_41 = arith.constant dense<0.000000e+00> : vector<8x64xf32>
    %111 = tpu.matmul %105, %110, %cst_41 {dimension_numbers = #tpu.dot_dimension_numbers<[1], [0], [0], [1], [0, 0, 1, 1], [], []>} : vector<8x32xbf16>, vector<32x64xbf16>, vector<8x64xf32> -> vector<8x64xf32>
    %112 = vector.broadcast %106 : vector<1x64xf32> to vector<8x64xf32>
    %113 = arith.addf %111, %112 : vector<8x64xf32>
    %cst_42 = arith.constant 0.000000e+00 : f32
    %114 = vector.broadcast %cst_42 : f32 to vector<8x64xf32>
    %115 = arith.maximumf %113, %114 : vector<8x64xf32>
    %116 = arith.truncf %115 : vector<8x64xf32> to vector<8x64xbf16>
    %c0_43 = arith.constant 0 : index
    %c0_44 = arith.constant 0 : index
    %117 = vector.load %arg12[%c0_43, %c0_44] : memref<64x32xbf16, #tpu.memory_space<vmem>>, vector<64x32xbf16>
    %cst_45 = arith.constant dense<0.000000e+00> : vector<8x32xf32>
    %118 = tpu.matmul %116, %117, %cst_45 {dimension_numbers = #tpu.dot_dimension_numbers<[1], [0], [0], [1], [0, 0, 1, 1], [], []>} : vector<8x64xbf16>, vector<64x32xbf16>, vector<8x32xf32> -> vector<8x32xf32>
    %119 = arith.addf %109, %118 : vector<8x32xf32>
    %120 = arith.addf %104, %119 : vector<8x32xf32>
    %c0_46 = arith.constant 0 : index
    %c0_47 = arith.constant 0 : index
    %121 = vector.load %arg16[%c0_46, %c0_47] : memref<1x32xf32, #tpu.memory_space<vmem>>, vector<1x32xf32>
    %c0_48 = arith.constant 0 : index
    %c0_49 = arith.constant 0 : index
    %122 = vector.load %arg17[%c0_48, %c0_49] : memref<1x32xf32, #tpu.memory_space<vmem>>, vector<1x32xf32>
    %cst_50 = arith.constant dense<0.000000e+00> : vector<8xf32>
    %123 = vector.multi_reduction <add>, %120, %cst_50 [1] : vector<8x32xf32> to vector<8xf32>
    %124 = vector.shape_cast %123 : vector<8xf32> to vector<8x1xf32>
    %cst_51 = arith.constant 3.200000e+01 : f32
    %125 = vector.broadcast %cst_51 : f32 to vector<8x1xf32>
    %126 = arith.divf %124, %125 : vector<8x1xf32>
    %127 = vector.broadcast %126 : vector<8x1xf32> to vector<8x32xf32>
    %128 = arith.subf %120, %127 : vector<8x32xf32>
    %129 = vector.broadcast %126 : vector<8x1xf32> to vector<8x32xf32>
    %130 = arith.subf %120, %129 : vector<8x32xf32>
    %131 = arith.mulf %128, %130 : vector<8x32xf32>
    %cst_52 = arith.constant dense<0.000000e+00> : vector<8xf32>
    %132 = vector.multi_reduction <add>, %131, %cst_52 [1] : vector<8x32xf32> to vector<8xf32>
    %133 = vector.shape_cast %132 : vector<8xf32> to vector<8x1xf32>
    %cst_53 = arith.constant 3.200000e+01 : f32
    %134 = vector.broadcast %cst_53 : f32 to vector<8x1xf32>
    %135 = arith.divf %133, %134 : vector<8x1xf32>
    %136 = vector.broadcast %126 : vector<8x1xf32> to vector<8x32xf32>
    %137 = arith.subf %120, %136 : vector<8x32xf32>
    %cst_54 = arith.constant 9.99999974E-6 : f32
    %138 = vector.broadcast %cst_54 : f32 to vector<8x1xf32>
    %139 = arith.addf %135, %138 : vector<8x1xf32>
    %140 = math.rsqrt %139 : vector<8x1xf32>
    %141 = vector.broadcast %140 : vector<8x1xf32> to vector<8x32xf32>
    %142 = arith.mulf %137, %141 : vector<8x32xf32>
    %143 = vector.broadcast %121 : vector<1x32xf32> to vector<8x32xf32>
    %144 = arith.mulf %142, %143 : vector<8x32xf32>
    %145 = vector.broadcast %122 : vector<1x32xf32> to vector<8x32xf32>
    %146 = arith.addf %144, %145 : vector<8x32xf32>
    %147 = vector.shape_cast %146 : vector<8x32xf32> to vector<1x8x32xf32>
    %148 = arith.truncf %147 : vector<1x8x32xf32> to vector<1x8x32xbf16>
    %c0_55 = arith.constant 0 : index
    %c0_56 = arith.constant 0 : index
    %c0_57 = arith.constant 0 : index
    %149 = vector.load %arg18[%c0_55, %c0_56, %c0_57] : memref<1x8x32xbf16, #tpu.memory_space<vmem>>, vector<1x8x32xbf16>
    tpu.vector_store %arg18[%c0_55, %c0_56, %c0_57], %148 {strides = array<i32>} : memref<1x8x32xbf16, #tpu.memory_space<vmem>>, vector<1x8x32xbf16>,
    return
  }
  func.func @transform_0(%arg0: i32) -> (i32, i32, i32) {
    %c0_i32 = arith.constant 0 : i32
    %c0_i32_0 = arith.constant 0 : i32
    %c0_i32_1 = arith.constant 0 : i32
    return %arg0, %c0_i32, %c0_i32_0 : i32, i32, i32
  }
  func.func @transform_1(%arg0: i32) -> (i32, i32) {
    %c0_i32 = arith.constant 0 : i32
    %c0_i32_0 = arith.constant 0 : i32
    %c0_i32_1 = arith.constant 0 : i32
    return %c0_i32, %c0_i32_0 : i32, i32
  }
  func.func @transform_2(%arg0: i32) -> (i32, i32) {
    %c0_i32 = arith.constant 0 : i32
    %c0_i32_0 = arith.constant 0 : i32
    %c0_i32_1 = arith.constant 0 : i32
    return %c0_i32, %c0_i32_0 : i32, i32
  }
  func.func @transform_3(%arg0: i32) -> (i32, i32) {
    %c0_i32 = arith.constant 0 : i32
    %c0_i32_0 = arith.constant 0 : i32
    %c0_i32_1 = arith.constant 0 : i32
    return %c0_i32, %c0_i32_0 : i32, i32
  }
  func.func @transform_4(%arg0: i32) -> (i32, i32) {
    %c0_i32 = arith.constant 0 : i32
    %c0_i32_0 = arith.constant 0 : i32
    %c0_i32_1 = arith.constant 0 : i32
    return %c0_i32, %c0_i32_0 : i32, i32
  }
  func.func @transform_5(%arg0: i32) -> (i32, i32) {
    %c0_i32 = arith.constant 0 : i32
    %c0_i32_0 = arith.constant 0 : i32
    %c0_i32_1 = arith.constant 0 : i32
    return %c0_i32, %c0_i32_0 : i32, i32
  }
  func.func @transform_6(%arg0: i32) -> (i32, i32) {
    %c0_i32 = arith.constant 0 : i32
    %c0_i32_0 = arith.constant 0 : i32
    %c0_i32_1 = arith.constant 0 : i32
    return %c0_i32, %c0_i32_0 : i32, i32
  }
  func.func @transform_7(%arg0: i32) -> (i32, i32) {
    %c0_i32 = arith.constant 0 : i32
    %c0_i32_0 = arith.constant 0 : i32
    %c0_i32_1 = arith.constant 0 : i32
    return %c0_i32, %c0_i32_0 : i32, i32
  }
  func.func @transform_8(%arg0: i32) -> (i32, i32) {
    %c0_i32 = arith.constant 0 : i32
    %c0_i32_0 = arith.constant 0 : i32
    %c0_i32_1 = arith.constant 0 : i32
    return %c0_i32, %c0_i32_0 : i32, i32
  }
  func.func @transform_9(%arg0: i32) -> (i32, i32) {
    %c0_i32 = arith.constant 0 : i32
    %c0_i32_0 = arith.constant 0 : i32
    %c0_i32_1 = arith.constant 0 : i32
    return %c0_i32, %c0_i32_0 : i32, i32
  }
  func.func @transform_10(%arg0: i32) -> (i32, i32) {
    %c0_i32 = arith.constant 0 : i32
    %c0_i32_0 = arith.constant 0 : i32
    %c0_i32_1 = arith.constant 0 : i32
    return %c0_i32, %c0_i32_0 : i32, i32
  }
  func.func @transform_11(%arg0: i32) -> (i32, i32) {
    %c0_i32 = arith.constant 0 : i32
    %c0_i32_0 = arith.constant 0 : i32
    %c0_i32_1 = arith.constant 0 : i32
    return %c0_i32, %c0_i32_0 : i32, i32
  }
  func.func @transform_12(%arg0: i32) -> (i32, i32) {
    %c0_i32 = arith.constant 0 : i32
    %c0_i32_0 = arith.constant 0 : i32
    %c0_i32_1 = arith.constant 0 : i32
    return %c0_i32, %c0_i32_0 : i32, i32
  }
  func.func @transform_13(%arg0: i32) -> (i32, i32) {
    %c0_i32 = arith.constant 0 : i32
    %c0_i32_0 = arith.constant 0 : i32
    %c0_i32_1 = arith.constant 0 : i32
    return %c0_i32, %c0_i32_0 : i32, i32
  }
  func.func @transform_14(%arg0: i32) -> (i32, i32) {
    %c0_i32 = arith.constant 0 : i32
    %c0_i32_0 = arith.constant 0 : i32
    %c0_i32_1 = arith.constant 0 : i32
    return %c0_i32, %c0_i32_0 : i32, i32
  }
  func.func @transform_15(%arg0: i32) -> (i32, i32) {
    %c0_i32 = arith.constant 0 : i32
    %c0_i32_0 = arith.constant 0 : i32
    %c0_i32_1 = arith.constant 0 : i32
    return %c0_i32, %c0_i32_0 : i32, i32
  }
  func.func @transform_16(%arg0: i32) -> (i32, i32) {
    %c0_i32 = arith.constant 0 : i32
    %c0_i32_0 = arith.constant 0 : i32
    %c0_i32_1 = arith.constant 0 : i32
    return %c0_i32, %c0_i32_0 : i32, i32
  }
  func.func @transform_17(%arg0: i32) -> (i32, i32, i32) {
    %c0_i32 = arith.constant 0 : i32
    %c0_i32_0 = arith.constant 0 : i32
    %c0_i32_1 = arith.constant 0 : i32
    return %arg0, %c0_i32, %c0_i32_0 : i32, i32, i32
  }
}

</mosaic_0001>

<bundles_post_ra>
// kernel: tpu_custom_call.1
= control target key start
LH: loop header
LB: loop body
LE: loop exit
PB: predicated region body
PF: predicated region fallthrough
CT: control target
= control target key end

     0   :  { %s1978_s0 = inlined_call_operand.vmem [shape: f32[2,8,32], index: 0, kind: input, shape index: {}]   ;;  %s1979_s1 = inlined_call_operand.vmem [shape: bf16[32,32], index: 1, kind: input, shape index: {}]   ;;  %s1980_s2 = inlined_call_operand.vmem [shape: f32[1,32], index: 2, kind: input, shape index: {}]   ;;  %s1981_s3 = inlined_call_operand.vmem [shape: bf16[32,32], index: 3, kind: input, shape index: {}]   ;;  %s1982_s4 = inlined_call_operand.vmem [shape: f32[1,32], index: 4, kind: input, shape index: {}]   ;;  %s1983_s5 = inlined_call_operand.hbm [shape: bf16[32,32], index: 5, kind: input, shape index: {}]   ;;  %s1984_s6 = inlined_call_operand.vmem [shape: f32[1,32], index: 6, kind: input, shape index: {}]   ;;  %s1985_s7 = inlined_call_operand.hbm [shape: bf16[32,32], index: 7, kind: input, shape index: {}]   ;;  %s1986_s8 = inlined_call_operand.vmem [shape: f32[1,32], index: 8, kind: input, shape index: {}]   ;;  %s1987_s9 = inlined_call_operand.hbm [shape: bf16[32,64], index: 9, kind: input, shape index: {}]   ;;  %s1988_s10 = inlined_call_operand.vmem [shape: f32[1,64], index: 10, kind: input, shape index: {}]   ;;  %s1989_s11 = inlined_call_operand.vmem [shape: bf16[64,32], index: 11, kind: input, shape index: {}]   ;;  %s1990_s12 = inlined_call_operand.vmem [shape: f32[1,32], index: 12, kind: input, shape index: {}]   ;;  %s1991_s13 = inlined_call_operand.vmem [shape: f32[1,32], index: 13, kind: input, shape index: {}]   ;;  %s1992_s14 = inlined_call_operand.vmem [shape: f32[1,32], index: 14, kind: input, shape index: {}]   ;;  %s1993_s15 = inlined_call_operand.vmem [shape: f32[1,32], index: 15, kind: input, shape index: {}]   ;;  %s1994_s16 = inlined_call_operand.vmem [shape: f32[1,32], index: 16, kind: input, shape index: {}]   ;;  %s1995_s17 = inlined_call_operand.hbm [shape: bf16[2,8,32], index: 17, kind: output, shape index: {}]  }
   0x1   :  { %2005 = sst [smem:[#allocation19_spill]] %s1978_s0 }
   0x2   :  { %2006 = sst [smem:[#allocation20_spill]] %s1979_s1 }
   0x3   :  { %2007 = sst [smem:[#allocation21_spill]] %s1983_s5 }
   0x4   :  { %2008 = sst [smem:[#allocation22_spill]] %s1985_s7 }
   0x5   :  { %22 = vsyncpa [#allocation3], 0 }
   0x6   :  { %23 = vsyncpa [#allocation6], 0 }
   0x7   :  { %24 = vsyncpa [#allocation4], 0 }
   0x8   :  { %26 = vsyncpa [#allocation4 + $0x1], 0  ;;  %s1749_s24 = smov 0   ;;  %s1751_s25 = smov 0  }
   0x9   :  { %s1753_s26 = smov 0   ;;  %s1755_s27 = smov 0  }
   0xa LB: > { %2009 = sst [smem:[#allocation12_spill]] %s1633_s24  ;;  %s1770_s28 = sadd.s32 4294967295, %s1645_s27   ;;  %s1645_s27 = sphi %s1755_s27, %s2028_s27   ;;  %s1641_s26 = sphi %s1753_s26, %s2030_s26   ;;  %s1637_s25 = sphi %s1751_s25, %s2032_s25   ;;  %s1633_s24 = sphi %s1749_s24, %s2031_s24  }
   0xb   : > { %2010 = sst [smem:[#allocation13_spill]] %s1641_s26  ;;  %s1274_s29 = sadd.s32 4294967294, %s1645_s27  }
   0xc   : > { %2011 = sst [smem:[#allocation14_spill]] %s1645_s27  ;;  %s1774_s0 = sadd.s32 1, %s1645_s27  }
   0xd   : > { %2012 = sst [smem:[#allocation15_spill]] %s1774_s0  ;;  %s401_s30 = sadd.s32 1, %s1641_s26 }
   0xe   : > { %s398_s18 = ssub.s32 %s1645_s27, %s1774_s0  ;;  %p411_p0 = scmp.ne.s32.totalorder %s1641_s26, %s1637_s25 }
   0xf   : > { %p399_p1 = scmp.eq.s32.totalorder %s398_s18, 0  ;;  %p412_p2 = scmp.eq.s32.totalorder %s1770_s28, 1 }
  0x10   : > { %p417_p3 = scmp.ne.s32.totalorder %s1637_s25, %s1633_s24  ;;  %p418_p4 = scmp.eq.s32.totalorder %s1274_s29, 1 }
  0x11   : > { %s1785_s19 = scalar_select %p399_p1, %s1641_s26, %s401_s30  }
  0x12   : > { %p1787_p5 = por %p412_p2, %p411_p0  ;;  %p1791_p6 = por %p418_p4, %p417_p3 }
  0x13   : > { %2013 = sst [smem:[#allocation16_spill]] %s1785_s19  ;;  %p1275_p7 = scmp.ge.s32.totalorder %s1645_s27, 1 }
  0x14   : > { %s2014_s1 = scalar_select %p1787_p5, 1, 0 }
  0x15   : > { %s2016_s20 = scalar_select %p1791_p6, 1, 0 }
  0x16   : > { %2015 = sst [smem:[#allocation17_spill]] %s2014_s1  ;;  %p425_p8 = scmp.lt.s32.totalorder %s1645_s27, 3 }
  0x17   : > { %2017 = sst [smem:[#allocation18_spill]] %s2016_s20  ;;  %p1402_p9 = scmp.eq.s32.totalorder %s1770_s28, 0 }
  0x18   : > { %p1798_p10 = pnand %p1275_p7, %p425_p8  ;;  %s2019_s7 = sld [smem:[#allocation22_spill]] }
  0x19   : > { %s2020_s5 = sld [smem:[#allocation21_spill]]  ;;  %s1647_s0 = smov [#allocation5]  }
  0x1a   : > { %p1388_p11 = pneg %p1798_p10  ;;  %s467_s20 = sshll.u32 %s1647_s0, 4  ;;  %s468_s20 = int_to_ptr.vmem [resolvable:$true] %s467_s20 }
  0x1b   : > { %s1648_s22 = smov 64   ;;  %s1649_s23 = smov 4  }
  0x1c   : > { %p1812_p12 = pnand %p1402_p9, %p1388_p11  ;;  %s1651_s27 = smov [#allocation7]  }
  0x1d   : > { %s484_s1 = sshll.u32 %s1651_s27, 4  ;;  %s485_s1 = int_to_ptr.vmem [resolvable:$true] %s484_s1 }
  0x1e   : > { %s465_s29 = sshll.u32 %s2019_s7, 4  ;;  %s1650_s7 = smov [#allocation2]   ;;  %s466_s29 = int_to_ptr.hbm [resolvable:$true] %s465_s29 }
  0x1f   : > { %s448_s19 = sshll.u32 %s2020_s5, 4  ;;  %s450_s24 = sshll.u32 %s1650_s7, 4  ;;  %s449_s19 = int_to_ptr.hbm [resolvable:$true] %s448_s19  ;;  %s451_s24 = int_to_ptr.vmem [resolvable:$true] %s450_s24 }
  0x20   : > { %1394 = dma.hbm_to_vmem [thread:$0]  (!%p1812_p12), %s466_s29, 256, %s468_s20, [#allocation6], %s1648_s22, %s1648_s22, %s1649_s23  }
  0x21   : > { %s482_s5 = sshll.u32 %s1987_s9, 4  ;;  %528 = sbr.rel (%p1798_p10) target bundleno = 1768 (0x6e8), region = 88  ;;  %s483_s5 = int_to_ptr.hbm [resolvable:$true] %s482_s5 }
  0x22   : > { %1391 = dma.hbm_to_vmem [thread:$0]  (!%p1812_p12), %s449_s19, 256, %s451_s24, [#allocation3], %s1648_s22, %s1648_s22, %s1649_s23  }
  0x23   : > { %1397 = dma.hbm_to_vmem [thread:$0]  (!%p1812_p12), %s483_s5, 256, %s485_s1, [#allocation6], %s1648_s22, %s1648_s22, %s1649_s23  }
  0x26   : > { %1620 = dma.done.wait (%p1402_p9), [#allocation3], 256  }
  0x27   : > { %1622 = vsyncadd (%p1402_p9), [#allocation3], 4294967040 }
  0x28   : > { %1624 = dma.done.wait (%p1402_p9), [#allocation6], 512  }
  0x29   : > { %1626 = vsyncadd (%p1402_p9), [#allocation6], 4294966784  ;;  %p590_p13 = scmp.lt.s32.totalorder %s1770_s28, 1  ;;  %s2022_s27 = sld [smem:[#allocation19_spill]]  ;;  %v1363_v1 = vld [vmem:[%s1981_s3 + $0x8] sm:$0xff]  ;;  %v1362_v3 = vld [vmem:[%s1981_s3] sm:$0xff] }
  0x2a   : > { %s2023_s20 = sld [smem:[#allocation20_spill]]  ;;  %661 = vmatpush.bf16.msra.mxu1 %v1363_v1  ;;  %vm617_vm0 = vcmask 261120   ;;  %v1453_v6 = vld [vmem:[%s1980_s2] ss:$0 sm:$0xff]  ;;  %vm743_vm1 = vcmask 64512   ;;  %s1654_s19 = smov 112  }
  0x2b   : > { %s591_s7 = scalar_select %p590_p13, %s1770_s28, 1  ;;  %v1454_v7 = vld [vmem:[%s1982_s4] ss:$0 sm:$0xff]  ;;  %v1365_v18 = vld [vmem:[#allocation2 + $0x8] sm:$0xff]  ;;  %vm863_vm2 = vcmask 1043456   ;;  %vm958_vm3 = vcmask 130048  }
  0x2c   : > { %694 = vmatpush.bf16.msra.mxu2 %v1365_v18  ;;  %v1364_v19 = vld [vmem:[#allocation2] sm:$0xff]  ;;  %s1655_s29 = smov 24   ;;  %s1656_s22 = smov 16   ;;  %vm960_vm4 = vcmask 195584   ;;  %vm1114_vm9 = vcmask 523264   ;;  %vm1166_vm13 = vcmask 257024  }
  0x2d   : > { %s1285_s5 = sshll.u32 %s591_s7, 3  ;;  %v1455_v37 = vld [vmem:[%s1984_s6] ss:$0 sm:$0xff]  ;;  %s1657_s23 = smov 8  }
  0x2e   : > { %662 = vmatpush.bf16.msra.mxu1 %v1362_v3  ;;  %s587_s24 = sand.u32 1, %s1637_s25  }
  0x2f   : > { %s593_s0 = scalar_lea.vmem %s2022_s27, %s1285_s5  ;;  %s1652_s27 = smov 120  }
  0x30   : > { %v1361_v0 = vld [vmem:[%s2023_s20 + $0x8] sm:$0xff]  ;;  %v1360_v2 = vld [vmem:[%s2023_s20] sm:$0xff]  ;;  %695 = vmatpush.bf16.msra.mxu2 %v1364_v19  ;;  %s1284_s26 = sshll.u32 %s587_s24, 2  ;;  %s1169_s5 = scalar_lea.sflag [#allocation4], %s587_s24 }
  0x31   : > { %627 = vmatpush.bf16.msra.mxu0 %v1361_v0  ;;  %v1852_v4 = vld [vmem:[%s593_s0] sm:$0xff]  ;;  %s1653_s0 = smov 104   ;;  %s589_s18 = scalar_lea.vmem [#allocation8], %s1284_s26 }
  0x32   : > { %v596_v5 = vpack.c.bf16 %v1852_v4, %v1852_v4  ;;  %s1181_s7 = sshll.u32 %s589_s18, 4  ;;  %s1595_s26 = scalar_lea.hbm %s1995_s17, 8  ;;  %s1182_s7 = int_to_ptr.vmem [resolvable:$true] %s1181_s7 }
  0x34   : > { %1303 = vmatmul.msk.bf16.vlgmr.msra.gmra.mxu1 %vm617_vm0, %v596_v5  ;;  %1312 = vmatmul.msk.bf16.vlgmr.msra.gmra.mxu2 %vm617_vm0, %v596_v5 }
  0x35   : > { %628 = vmatpush.bf16.msra.mxu0 %v1360_v2 }
  0x38   : > { %1294 = vmatmul.msk.bf16.vlgmr.msra.gmra.mxu0 %vm617_vm0, %v596_v5 }
  0xb1   : > { %v664_v9 = vpop.f32.mrf.mxu1 }
  0xb2   : > { %v665_v11 = vadd.f32 %v1454_v7, %v664_v9 }
  0xb4   : > { %716 = vrot.lane.b32.xlu1 %v665_v11, %s1652_s27  ;;  %722 = vrot.lane.b32.xlu0 %v665_v11, %s1653_s0  ;;  %v725_v13 = vpack.c.bf16 %v665_v11, %v665_v11 }
  0xb5   : > { %v630_v8 = vpop.f32.mrf.mxu0 }
  0xb6   : > { %v631_v10 = vadd.f32 %v1453_v6, %v630_v8  ;;  %v748_v14 = vsel %vm743_vm1, %v725_v13, 0 }
  0xb7   : > { %757 = vmatpush.bf16.xpose.msra.mxu3 %v748_v14  ;;  %v697_v38 = vpop.f32.mrf.mxu2 }
  0xb8   : > { %v634_v12 = vmul.f32 0.35355338, %v631_v10  ;;  %v698_v39 = vadd.f32 %v1455_v37, %v697_v38 }
  0xb9   : > { %v666_v16 = vpop.f32.mrf.mxu1 }
  0xba   : > { %702 = vrot.lane.b32.xlu2 %v634_v12, %s1652_s27  ;;  %v711_v17 = vpack.c.bf16 %v634_v12, %v634_v12  ;;  %v739_v40 = vpack.c.bf16 %v698_v39, %v698_v39 }
  0xbc   : > { %719 = vrot.lane.b32.xlu1 %v665_v11, %s1654_s19  ;;  %708 = vrot.lane.b32.xlu0 %v634_v12, %s1653_s0  ;;  %v865_v41 = vsel %vm863_vm2, %v739_v40, 0 }
  0xbd   : > { %v632_v15 = vpop.f32.mrf.mxu0 }
  0xbe   : > { %1313 = vmatmul.msk.bf16.vlgmr.msra.gmra.mxu3 %vm743_vm1, %v711_v17 }
  0xbf   : > { %874 = vmatpush.bf16.msrb.mxu3 %v865_v41  ;;  %v699_v42 = vpop.f32.mrf.mxu2  ;;  %v1366_v41 = vld [vmem:[#allocation5] sm:$0xff] }
  0xc2   : > { %705 = vrot.lane.b32.xlu2 %v634_v12, %s1654_s19 }
 0x114   : > { %v703_v26 = vpop.permute.xlu2 %702 }
 0x115   : > { %v712_v29 = vpack.c.bf16 %v703_v26, %v703_v26 }
 0x11c   : > { %v706_v33 = vpop.permute.xlu2 %705 }
 0x11d   : > { %v713_v34 = vpack.c.bf16 %v706_v33, %v706_v33 }
 0x126   : > { %v717_v20 = vpop.permute.xlu1 %716  ;;  %v723_v21 = vpop.permute.xlu0 %722 }
 0x127   : > { %v726_v22 = vpack.c.bf16 %v717_v20, %v717_v20  ;;  %v728_v23 = vpack.c.bf16 %v723_v21, %v723_v21 }
 0x129   : > { %v767_v24 = vsel %vm743_vm1, %v726_v22, 0  ;;  %v805_v25 = vsel %vm743_vm1, %v728_v23, 0 }
 0x12a   : > { %776 = vmatpush.bf16.xpose.msrb.mxu0 %v767_v24  ;;  %814 = vmatpush.bf16.xpose.msrb.mxu2 %v805_v25 }
 0x12e   : > { %v720_v27 = vpop.permute.xlu1 %719  ;;  %v709_v28 = vpop.permute.xlu0 %708 }
 0x12f   : > { %v727_v30 = vpack.c.bf16 %v720_v27, %v720_v27  ;;  %v714_v31 = vpack.c.bf16 %v709_v28, %v709_v28 }
 0x131   : > { %1314 = vmatmul.msk.bf16.vlgmr.msrb.gmra.mxu0 %vm743_vm1, %v712_v29  ;;  %1316 = vmatmul.msk.bf16.vlgmr.msrb.gmra.mxu2 %vm743_vm1, %v714_v31  ;;  %v786_v32 = vsel %vm743_vm1, %v727_v30, 0 }
 0x132   : > { %795 = vmatpush.bf16.xpose.msrb.mxu1 %v786_v32 }
 0x139   : > { %1315 = vmatmul.msk.bf16.vlgmr.msrb.gmra.mxu1 %vm743_vm1, %v713_v34 }
 0x141   : > { %v1879_v35 = vpop.f32.mrf.mxu3 }
 0x142   : > { %v820_v52 = vsel %vm743_vm1, %v1879_v35, -inf }
 0x149   : > { %v761_v36 = vpop.f32.mrf.mxu3 }
 0x1ae   : > { %v778_v43 = vpop.f32.mrf.mxu0 }
 0x1af   : > { %v823_v44 = vsel %vm743_vm1, %v778_v43, -inf }
 0x1b0   : > { %824 = vmax.xlane.f32.xlu1 %v823_v44 }
 0x1b4   : > { %v816_v45 = vpop.f32.mrf.mxu2 }
 0x1b5   : > { %v829_v46 = vsel %vm743_vm1, %v816_v45, -inf }
 0x1b6   : > { %v780_v47 = vpop.f32.mrf.mxu0  ;;  %v797_v48 = vpop.f32.mrf.mxu1  ;;  %830 = vmax.xlane.f32.xlu0 %v829_v46 }
 0x1b7   : > { %v826_v49 = vsel %vm743_vm1, %v797_v48, -inf }
 0x1b8   : > { %827 = vmax.xlane.f32.xlu2 %v826_v49 }
 0x1bc   : > { %v818_v50 = vpop.f32.mrf.mxu2 }
 0x1be   : > { %v799_v51 = vpop.f32.mrf.mxu1 }
 0x1c9   : > { %733 = vrot.lane.b32.xlu1 %v698_v39, %s1654_s19 }
 0x1ca   : > { %730 = vrot.lane.b32.xlu0 %v698_v39, %s1652_s27  ;;  %s1357_s27 = sshll.u32 %s1770_s28, 2 }
 0x1d0   : > { %736 = vrot.lane.b32.xlu2 %v698_v39, %s1653_s0  ;;  %v1367_v39 = vld [vmem:[#allocation5 + $0x8] sm:$0xff] }
 0x1d1   : > { %992 = vmatpush.bf16.msra.mxu3 %v1367_v39 }
 0x1d5   : > { %993 = vmatpush.bf16.msra.mxu3 %v1366_v41 }
 0x1f4   : > { %821 = vmax.xlane.f32.xlu0 %v820_v52  ;;  %v1456_v52 = vld [vmem:[%s1986_s8] ss:$0 sm:$0xff] }
 0x223   : > { %v825_v53 = vpop.xlane.xlu1 %824 }
 0x224   : > { %v833_v54 = vsub.f32 %v778_v43, %v825_v53 }
 0x226   : > { %v838_v55 = vmul.f32 1.442695, %v833_v54 }
 0x228   : > { %1463 = vpow2.f32 %v838_v55 }
 0x229   : > { %v831_v56 = vpop.xlane.xlu0 %830 }
 0x22a   : > { %v835_v57 = vsub.f32 %v816_v45, %v831_v56 }
 0x22b   : > { %v828_v58 = vpop.xlane.xlu2 %827 }
 0x22c   : > { %v842_v59 = vmul.f32 1.442695, %v835_v57  ;;  %v834_v60 = vsub.f32 %v797_v48, %v828_v58  ;;  %v1658_v58 = vmov 32.0  }
 0x22e   : > { %v1464_v61 = vpop.eup %1463  ;;  %1465 = vpow2.f32 %v842_v59  ;;  %v840_v62 = vmul.f32 1.442695, %v834_v60 }
 0x22f   : > { %v847_v63 = vsel %vm743_vm1, %v1464_v61, 0.0  ;;  %v857_v16 = vpack.c.bf16 %v1464_v61, %v1464_v61 }
 0x230   : > { %1467 = vpow2.f32 %v840_v62  ;;  %848 = vadd.xlane.f32.xlu2 %v847_v63 }
 0x233   : > { %v737_v0 = vpop.permute.xlu2 %736 }
 0x234   : > { %v1466_v1 = vpop.eup %1465  ;;  %v742_v2 = vpack.c.bf16 %v737_v0, %v737_v0 }
 0x235   : > { %v853_v3 = vsel %vm743_vm1, %v1466_v1, 0.0  ;;  %v859_v8 = vpack.c.bf16 %v1466_v1, %v1466_v1 }
 0x236   : > { %v1468_v5 = vpop.eup %1467  ;;  %v922_v6 = vsel %vm863_vm2, %v742_v2, 0  ;;  %854 = vadd.xlane.f32.xlu0 %v853_v3 }
 0x237   : > { %931 = vmatpush.bf16.msra.mxu2 %v922_v6  ;;  %v850_v7 = vsel %vm743_vm1, %v1468_v5, 0.0  ;;  %v858_v15 = vpack.c.bf16 %v1468_v5, %v1468_v5 }
 0x238   : > { %851 = vadd.xlane.f32.xlu1 %v850_v7  ;;  %v1368_v7 = vld [vmem:[#allocation7] sm:$0xff] }
 0x23a   : > { %1320 = vmatmul.msk.bf16.vlgmr.msra.gmra.mxu2 %vm743_vm1, %v859_v8  ;;  %v1373_v8 = vld [vmem:[%s1989_s11 + $0x18] sm:$0xff] }
 0x23b   : > { %v734_v9 = vpop.permute.xlu1 %733 }
 0x23c   : > { %v741_v10 = vpack.c.bf16 %v734_v9, %v734_v9  ;;  %v731_v11 = vpop.permute.xlu0 %730 }
 0x23d   : > { %v740_v12 = vpack.c.bf16 %v731_v11, %v731_v11  ;;  %v1372_v11 = vld [vmem:[%s1989_s11 + $0x10] sm:$0xff] }
 0x23e   : > { %v903_v13 = vsel %vm863_vm2, %v741_v10, 0 }
 0x23f   : > { %v884_v14 = vsel %vm863_vm2, %v740_v12, 0  ;;  %912 = vmatpush.bf16.msra.mxu1 %v903_v13 }
 0x240   : > { %893 = vmatpush.bf16.msra.mxu0 %v884_v14 }
 0x242   : > { %1319 = vmatmul.msk.bf16.vlgmr.msra.gmra.mxu1 %vm743_vm1, %v858_v15 }
 0x243   : > { %1318 = vmatmul.msk.bf16.vlgmr.msra.gmra.mxu0 %vm743_vm1, %v857_v16  ;;  %1122 = vmatpush.bf16.msrb.mxu1 %v1373_v8 }
 0x247   : > { %1123 = vmatpush.bf16.msrb.mxu1 %v1372_v11 }
 0x267   : > { %v822_v17 = vpop.xlane.xlu0 %821 }
 0x268   : > { %v832_v18 = vsub.f32 %v1879_v35, %v822_v17 }
 0x26a   : > { %v836_v19 = vmul.f32 1.442695, %v832_v18 }
 0x26c   : > { %1469 = vpow2.f32 %v836_v19  ;;  %v1457_v19 = vld [vmem:[%s1991_s13] ss:$0 sm:$0xff] }
 0x272   : > { %v1470_v20 = vpop.eup %1469 }
 0x273   : > { %v844_v21 = vsel %vm743_vm1, %v1470_v20, 0.0  ;;  %v856_v22 = vpack.c.bf16 %v1470_v20, %v1470_v20 }
 0x274   : > { %845 = vadd.xlane.f32.xlu2 %v844_v21  ;;  %v1458_v21 = vld [vmem:[%s1992_s14] ss:$0 sm:$0xff] }
 0x275   : > { %1317 = vmatmul.msk.bf16.vlgmr.msrb.gmra.mxu3 %vm743_vm1, %v856_v22 }
 0x2a3   : > { %v849_v25 = vpop.xlane.xlu2 %848 }
 0x2a9   : > { %v855_v23 = vpop.xlane.xlu0 %854 }
 0x2aa   : > { %1471 = vrcp.f32 %v855_v23 }
 0x2ab   : > { %v852_v24 = vpop.xlane.xlu1 %851 }
 0x2ac   : > { %1473 = vrcp.f32 %v852_v24 }
 0x2ad   : > { %1475 = vrcp.f32 %v849_v25 }
 0x2b0   : > { %v1472_v26 = vpop.eup %1471 }
 0x2b2   : > { %v1474_v29 = vpop.eup %1473 }
 0x2b3   : > { %v1476_v31 = vpop.eup %1475 }
 0x2bd   : > { %v933_v27 = vpop.f32.mrf.mxu2 }
 0x2be   : > { %v944_v28 = vmul.f32 %v1472_v26, %v933_v27  ;;  %v1371_v26 = vld [vmem:[%s1989_s11 + $0x8] sm:$0xff]  ;;  %v1370_v27 = vld [vmem:[%s1989_s11] sm:$0xff] }
 0x2bf   : > { %v914_v30 = vpop.f32.mrf.mxu1  ;;  %1124 = vmatpush.bf16.msrb.mxu1 %v1371_v26 }
 0x2c0   : > { %v943_v32 = vmul.f32 %v1474_v29, %v914_v30  ;;  %v895_v33 = vpop.f32.mrf.mxu0  ;;  %954 = vrot.lane.b32.xlu2 %v944_v28, %s1655_s29  ;;  %v1459_v28 = vld [vmem:[%s1988_s10] ss:$0 sm:$0xff] }
 0x2c1   : > { %v942_v34 = vmul.f32 %v1476_v31, %v895_v33 }
 0x2c2   : > { %950 = vrot.lane.b32.xlu0 %v943_v32, %s1656_s22 }
 0x2c3   : > { %946 = vrot.lane.b32.xlu1 %v942_v34, %s1657_s23  ;;  %1125 = vmatpush.bf16.msrb.mxu1 %v1370_v27  ;;  %v1460_v34 = vld [vmem:[%s1990_s12] ss:$0 sm:$0xff]  ;;  %s1179_s23 = scalar_lea.hbm %s1995_s17, %s1357_s27 }
 0x2c4   : > { %s1183_s28 = sshll.u32 %s1179_s23, 4  ;;  %s1184_s28 = int_to_ptr.hbm [resolvable:$true] %s1183_s28 }
 0x2c5   : > { %v935_v35 = vpop.f32.mrf.mxu2  ;;  %s1589_s0 = sshra.s32 %s1184_s28, 4  ;;  %s1590_s0 = int_to_ptr.hbm [resolvable:$true] %s1589_s0 }
 0x2c6   : > { %s1591_s19 = scalar_lea.hbm %s1590_s0, 4  ;;  %p1596_p3 = scmp.lt.s32.totalorder %s1590_s0, %s1995_s17 }
 0x2c7   : > { %v916_v36 = vpop.f32.mrf.mxu1  ;;  %p1592_p0 = scmp.ne.s32.totalorder %s1590_s0, %s1591_s19  ;;  %p1597_p4 = scmp.lt.s32.totalorder %s1595_s26, %s1591_s19 }
 0x2c8   : > { %v897_v37 = vpop.f32.mrf.mxu0 }
 0x2c9   : > { %p1593_p1 = pnand %p1592_p0, %p1787_p5  ;;  %p1598_p7 = por %p1597_p4, %p1596_p3 }
 0x2cb   : > { %p1594_p2 = pneg %p1593_p1 }
 0x2cd   : > { %p1599_p8 = pnand %p1598_p7, %p1594_p2 }
 0x2e7   : > { %v846_v42 = vpop.xlane.xlu2 %845 }
 0x2e8   : > { %1477 = vrcp.f32 %v846_v42 }
 0x2e9   : > { %1479 = vrcp.f32 %v1658_v58 }
 0x2ee   : > { %v1478_v43 = vpop.eup %1477 }
 0x2ef   : > { %v1480_v59 = vpop.eup %1479 }
 0x2f0   : > { %v1006_v60 = vmul.f32 32.0, %v1480_v59  ;;  %vm1010_vm5 = vweird.f32 %v1480_v59 }
 0x2f2   : > { %v1007_v61 = vsub.f32 1.0, %v1006_v60 }
 0x2f4   : > { %v1008_v62 = vmul.f32 %v1480_v59, %v1007_v61 }
 0x2f6   : > { %v1009_v63 = vadd.f32 %v1480_v59, %v1008_v62 }
 0x2f8   : > { %v876_v38 = vpop.f32.mrf.mxu3  ;;  %v1011_v0 = vsel %vm1010_vm5, %v1480_v59, %v1009_v63 }
 0x2f9   : > { %v941_v44 = vmul.f32 %v1478_v43, %v876_v38 }
 0x300   : > { %v878_v40 = vpop.f32.mrf.mxu3 }
 0x31a   : > { %v955_v48 = vpop.permute.xlu2 %954 }
 0x334   : > { %v951_v46 = vpop.permute.xlu0 %950 }
 0x335   : > { %v947_v45 = vpop.permute.xlu1 %946 }
 0x336   : > { %v957_v47 = vsel %vm743_vm1, %v941_v44, %v947_v45 }
 0x337   : > { %v959_v49 = vsel %vm958_vm3, %v957_v47, %v951_v46 }
 0x338   : > { %v961_v50 = vsel %vm960_vm4, %v959_v49, %v955_v48 }
 0x339   : > { %v962_v51 = vpack.c.bf16 %v961_v50, %v961_v50 }
 0x33b   : > { %1329 = vmatmul.msk.bf16.vlgmr.msra.gmra.mxu3 %vm617_vm0, %v962_v51 }
 0x3be   : > { %v995_v53 = vpop.f32.mrf.mxu3 }
 0x3bf   : > { %v996_v54 = vadd.f32 %v1456_v52, %v995_v53 }
 0x3c1   : > { %v999_v55 = vadd.f32 %v996_v54, %v1852_v4  ;;  %v1369_v4 = vld [vmem:[#allocation7 + $0x8] sm:$0xff]  ;;  %v1461_v54 = vld [vmem:[%s1993_s15] ss:$0 sm:$0xff] }
 0x3c2   : > { %1073 = vmatpush.bf16.msrb.mxu0 %v1369_v4 }
 0x3c3   : > { %v1002_v56 = vsel %vm617_vm0, %v999_v55, 0.0 }
 0x3c4   : > { %1003 = vadd.xlane.f32.xlu0 %v1002_v56  ;;  %v1462_v56 = vld [vmem:[%s1994_s16] ss:$0 sm:$0xff] }
 0x3c6   : > { %v997_v57 = vpop.f32.mrf.mxu3  ;;  %1074 = vmatpush.bf16.msrb.mxu0 %v1368_v7 }
 0x437   : > { %v1004_v1 = vpop.xlane.xlu0 %1003 }
 0x438   : > { %v1012_v2 = vmul.f32 %v1011_v0, %v1004_v1 }
 0x43a   : > { %v1013_v3 = vsub.f32 %v999_v55, %v1012_v2 }
 0x43c   : > { %v1014_v5 = vmul.f32 %v1013_v3, %v1013_v3 }
 0x43e   : > { %v1015_v6 = vsel %vm617_vm0, %v1014_v5, 0.0 }
 0x43f   : > { %1016 = vadd.xlane.f32.xlu1 %v1015_v6 }
 0x4b2   : > { %v1017_v9 = vpop.xlane.xlu1 %1016 }
 0x4b3   : > { %v1018_v10 = vmul.f32 %v1017_v9, %v1011_v0 }
 0x4b5   : > { %v1019_v12 = vadd.f32 1e-05, %v1018_v10 }
 0x4b7   : > { %1481 = vrsqrt.f32 %v1019_v12  ;;  %vm1026_vm7 = vweird.f32 %v1019_v12 }
 0x4bd   : > { %v1482_v13 = vpop.eup %1481 }
 0x4be   : > { %v1021_v14 = vmul.f32 %v1482_v13, %v1019_v12  ;;  %vm1027_vm6 = vweird.f32 %v1482_v13 }
 0x4bf   : > { %vm1028_vm8 = vmor %vm1026_vm7, %vm1027_vm6 }
 0x4c0   : > { %v1022_v15 = vmul.f32 %v1482_v13, %v1021_v14 }
 0x4c2   : > { %v1023_v16 = vmul.f32 0.5, %v1022_v15 }
 0x4c4   : > { %v1024_v17 = vsub.f32 1.5, %v1023_v16 }
 0x4c6   : > { %v1025_v18 = vmul.f32 %v1482_v13, %v1024_v17 }
 0x4c8   : > { %v1029_v20 = vsel %vm1028_vm8, %v1482_v13, %v1025_v18 }
 0x4c9   : > { %v1030_v22 = vmul.f32 %v1029_v20, %v1013_v3 }
 0x4cb   : > { %v1034_v23 = vmul.f32 %v1457_v19, %v1030_v22 }
 0x4cd   : > { %v1038_v24 = vadd.f32 %v1458_v21, %v1034_v23 }
 0x4cf   : > { %v1039_v25 = vpack.c.bf16 %v1038_v24, %v1038_v24 }
 0x4d1   : > { %1338 = vmatmul.msk.bf16.vlgmr.msrb.gmra.mxu0 %vm617_vm0, %v1039_v25 }
 0x54e   : > { %v1076_v29 = vpop.f32.mrf.mxu0 }
 0x54f   : > { %v1077_v30 = vadd.f32 %v1459_v28, %v1076_v29 }
 0x551   : > { %v1080_v31 = vmax.f32 %v1077_v30, 0.0 }
 0x553   : > { %v1081_v32 = vpack.c.bf16 %v1080_v31, %v1080_v31 }
 0x555   : > { %1355 = vmatmul.msk.bf16.vlgmr.msrb.gmra.mxu1 %vm1114_vm9, %v1081_v32 }
 0x556   : > { %v1078_v33 = vpop.f32.mrf.mxu0 }
 0x5d2   : > { %v1127_v35 = vpop.f32.mrf.mxu1 }
 0x5d3   : > { %v1131_v36 = vadd.f32 %v1460_v34, %v1127_v35 }
 0x5d5   : > { %v1132_v37 = vadd.f32 %v1131_v36, %v1038_v24 }
 0x5d7   : > { %v1135_v38 = vsel %vm617_vm0, %v1132_v37, 0.0 }
 0x5d8   : > { %1136 = vadd.xlane.f32.xlu2 %v1135_v38 }
 0x5da   : > { %v1129_v39 = vpop.f32.mrf.mxu1 }
 0x64b   : > { %v1137_v40 = vpop.xlane.xlu2 %1136 }
 0x64c   : > { %v1138_v41 = vmul.f32 %v1137_v40, %v1011_v0 }
 0x64e   : > { %v1139_v42 = vsub.f32 %v1132_v37, %v1138_v41 }
 0x650   : > { %v1140_v43 = vmul.f32 %v1139_v42, %v1139_v42 }
 0x652   : > { %v1141_v44 = vsel %vm617_vm0, %v1140_v43, 0.0 }
 0x653   : > { %1142 = vadd.xlane.f32.xlu0 %v1141_v44 }
 0x6c6   : > { %v1143_v45 = vpop.xlane.xlu0 %1142 }
 0x6c7   : > { %v1144_v46 = vmul.f32 %v1143_v45, %v1011_v0 }
 0x6c9   : > { %v1145_v47 = vadd.f32 1e-05, %v1144_v46 }
 0x6cb   : > { %1483 = vrsqrt.f32 %v1145_v47  ;;  %vm1152_vm11 = vweird.f32 %v1145_v47 }
 0x6d1   : > { %v1484_v48 = vpop.eup %1483 }
 0x6d2   : > { %v1147_v49 = vmul.f32 %v1484_v48, %v1145_v47  ;;  %vm1153_vm10 = vweird.f32 %v1484_v48 }
 0x6d3   : > { %vm1154_vm12 = vmor %vm1152_vm11, %vm1153_vm10 }
 0x6d4   : > { %v1148_v50 = vmul.f32 %v1484_v48, %v1147_v49 }
 0x6d6   : > { %v1149_v51 = vmul.f32 0.5, %v1148_v50 }
 0x6d8   : > { %v1150_v52 = vsub.f32 1.5, %v1149_v51 }
 0x6da   : > { %v1151_v53 = vmul.f32 %v1484_v48, %v1150_v52 }
 0x6dc   : > { %v1155_v55 = vsel %vm1154_vm12, %v1484_v48, %v1151_v53 }
 0x6dd   : > { %v1156_v57 = vmul.f32 %v1155_v55, %v1139_v42 }
 0x6df   : > { %v1160_v58 = vmul.f32 %v1461_v54, %v1156_v57 }
 0x6e1   : > { %v1164_v59 = vadd.f32 %v1462_v56, %v1160_v58 }
 0x6e3   : > { %v1165_v60 = vpack.c.bf16 %v1164_v59, %v1164_v59 }
 0x6e5   : > { %1167 = vst.msk [vmem:[%s589_s18] sm:$0xf] %vm1166_vm13, %v1165_v60 }
 0x6e6   : > { %1602 = shalt.err (!%p1599_p8)
}
 0x6e7   : > { %1386 = dma.vmem_to_hbm [thread:$0]  (%p1787_p5), %s1182_s7, 64, %s1184_s28, %s1169_s5  }
 0x6e8 PF: > { %s2025_s24 = sld [smem:[#allocation14_spill]] }
 0x6e9   : > { %s2026_s22 = sld [smem:[#allocation12_spill]] }
 0x6ee   : > { %p1408_p9 = scmp.ge.s32.totalorder %s2025_s24, 2 }
 0x6ef   : > { %s1195_s18 = sand.u32 1, %s2026_s22  }
 0x6f0   : > { %p1399_p10 = pnand %p1408_p9, %p1791_p6  ;;  %s1196_s27 = scalar_lea.sflag [#allocation4], %s1195_s18 }
 0x6f2   : > { %p1400_p11 = pneg %p1399_p10 }
 0x6f4   : > { %1628 = dma.done.wait (%p1400_p11), %s1196_s27, 64  }
 0x6f5   : > { %1630 = vsyncadd (%p1400_p11), %s1196_s27, 4294967232  ;;  %s2028_s27 = sld [smem:[#allocation15_spill]]  ;;  %s2031_s24 = smov %s1637_s25 }
 0x6f6   : > { %s2029_s0 = sld [smem:[#allocation13_spill]] }
 0x6f7   : > { %s2030_s26 = sld [smem:[#allocation16_spill]] }
 0x6fb   : > { %p29_p12 = scmp.ge.s32.totalorder %s2028_s27, 4  }
 0x6fc   : > { %s2032_s25 = smov %s2029_s0 }
 0x6fd   :  { %31 = sbr.rel (!%p29_p12) target bundleno = 10 (0xa), region = 136 }
 0x702   :  { %1202 = vsyncpa [#allocation3], 1 }
 0x703   :  { %1204 = vsyncpa [#allocation3 + $0x1], 1 }
 0x704   :  { %1205 = vsyncpa [#allocation6], 1 }
 0x705   :  { %1206 = vsyncpa [#allocation4], 1 }
 0x706   :  { %1208 = vsyncpa [#allocation4 + $0x1], 1 }

</bundles_post_ra>
